<compile_context>
chip_gen: v7x
topology: tpu7x:2x2x1
jax: 0.10.0
libtpu: 0.0.40
codegen_flags: <defaults>
</compile_context>

<pallas_src>
import jax
import jax.numpy as jnp
from jax.experimental import pallas as pl
from jax.experimental.pallas import tpu as pltpu

_CLAMP = 20.0                        # for x > 20, tanh(softplus(x)) ~= 1
_MAX_BLOCK_BYTES = 4 * 1024 * 1024   # ~4 MiB per operand block
_VMEM_LIMIT_BYTES = 32 * 1024 * 1024  # explicit scoped-VMEM budget, all gens
_LANE_CANDIDATES = (512, 256, 128)    # lane-dense last-dim widths


def _mish_kernel(x_ref, o_ref):
    x = x_ref[...].astype(jnp.float32)
    # t = 1 + exp(x), clamped so t*t never overflows f32.
    t = 1.0 + jnp.exp(jnp.minimum(x, _CLAMP))
    t2 = t * t
    # tanh(log(t)) = (t^2 - 1) / (t^2 + 1).  Exact division is free here:
    # the kernel is DMA-bound, EUP/VALU slots have huge slack.
    y = x * (t2 - 1.0) / (t2 + 1.0)
    # For large x, mish(x) -> x; also covers the clamp region exactly.
    o_ref[...] = jnp.where(x > _CLAMP, x, y).astype(o_ref.dtype)


def _mish_2d(x2d):
    """Run the kernel on a (rows, lane) slab; lane must be a multiple of 128."""
    rows, lane = x2d.shape
    itemsize = jnp.dtype(x2d.dtype).itemsize

    # Largest row-block keeping one operand block <= ~4 MiB, multiple of 8.
    max_rows = max(8, (_MAX_BLOCK_BYTES // (lane * itemsize)) // 8 * 8)

    if rows <= 16:
        tm = rows                     # full-dim block: always a legal shape
    else:
        # Guarantee >= 2 grid steps so both v7x TensorCores get work.
        half = -(-rows // 2)
        tm = min(-(-half // 8) * 8, max_rows)
    grid_rows = -(-rows // tm)        # partial last block handled by Pallas

    n = rows * lane
    cost = pl.CostEstimate(
        flops=8 * n,
        transcendentals=n,
        bytes_accessed=2 * n * itemsize,
    )

    return pl.pallas_call(
        _mish_kernel,
        out_shape=jax.ShapeDtypeStruct((rows, lane), x2d.dtype),
        grid=(grid_rows,),
        in_specs=[pl.BlockSpec((tm, lane), lambda i: (i, 0))],
        out_specs=pl.BlockSpec((tm, lane), lambda i: (i, 0)),
        compiler_params=pltpu.CompilerParams(
            dimension_semantics=("parallel",),
            vmem_limit_bytes=_VMEM_LIMIT_BYTES,
        ),
        cost_estimate=cost,
    )(x2d)


def mish(x):
    """Elementwise Mish: x * tanh(softplus(x)). Accepts any shape (e.g. NCHW)."""
    orig_shape = x.shape
    n = x.size
    if n == 0:
        return x

    flat = x.reshape(-1)              # contiguous reshape: no data movement

    # Common case: size divides a lane-dense width -> zero-copy 2D view,
    # no pad, no trailing slice.
    for lane in _LANE_CANDIDATES:
        if n % lane == 0:
            out = _mish_2d(flat.reshape(n // lane, lane))
            return out.reshape(orig_shape)

    # Ragged size (n % 128 != 0): kernel on the 512-aligned prefix, tiny
    # plain-jnp op on the <512-element tail, then stitch.  Avoids the
    # pad-whole-array + un-slice round trip of the previous version.
    lane = _LANE_CANDIDATES[0]
    n_main = (n // lane) * lane
    tail = flat[n_main:]
    tail_out = (tail * jnp.tanh(jnp.logaddexp(tail, 0.0))).astype(x.dtype)
    if n_main == 0:
        return tail_out.reshape(orig_shape)
    main_out = _mish_2d(flat[:n_main].reshape(n_main // lane, lane)).reshape(-1)
    return jnp.concatenate([main_out, tail_out]).reshape(orig_shape)


if __name__ == "__main__":
    key = jax.random.PRNGKey(0)
    k0, k1 = jax.random.split(key)

    # Small NCHW input consistent with the module's typical conv-net usage.
    x = jax.random.normal(k0, (2, 4, 16, 16), dtype=jnp.float32)
    y = mish(x)
    jax.block_until_ready(y)

    ref = x * jnp.tanh(jnp.logaddexp(x, 0.0))
    assert y.shape == x.shape and y.dtype == x.dtype
    err = float(jnp.max(jnp.abs(y - ref)))
    assert err < 1e-4, err

    # Ragged-size path (n % 128 != 0): aligned-prefix kernel + jnp tail.
    x2 = jax.random.normal(k1, (3, 5, 77), dtype=jnp.float32)
    y2 = mish(x2)
    jax.block_until_ready(y2)
    ref2 = x2 * jnp.tanh(jnp.logaddexp(x2, 0.0))
    err2 = float(jnp.max(jnp.abs(y2 - ref2)))
    assert y2.shape == x2.shape and y2.dtype == x2.dtype and err2 < 1e-4, err2

    print("KERNEL_OK")
</pallas_src>

<mosaic_0001>
module attributes {stable_mosaic.version = 11 : i64} {
  func.func @_mish_kernel(%arg0: i32, %arg1: memref<4x512xf32, #tpu.memory_space<vmem>>, %arg2: memref<4x512xf32, #tpu.memory_space<vmem>>) attributes {dimension_semantics = [#tpu.dimension_semantics<parallel>], iteration_bounds = array<i64: 1>, scalar_prefetch = 0 : i64, scratch_operands = 0 : i64, tpu.core_type = #tpu.core_type<tc>, window_params = [{transform_indices = @transform_0, window_bounds = array<i64: 4, 512>}, {transform_indices = @transform_1, window_bounds = array<i64: 4, 512>}]} {
    %c0 = arith.constant 0 : index
    %c0_0 = arith.constant 0 : index
    %0 = vector.load %arg1[%c0, %c0_0] : memref<4x512xf32, #tpu.memory_space<vmem>>, vector<4x512xf32>
    %cst = arith.constant 2.000000e+01 : f32
    %1 = vector.broadcast %cst : f32 to vector<4x512xf32>
    %2 = arith.minimumf %0, %1 : vector<4x512xf32>
    %3 = math.exp %2 : vector<4x512xf32>
    %cst_1 = arith.constant 1.000000e+00 : f32
    %4 = vector.broadcast %cst_1 : f32 to vector<4x512xf32>
    %5 = arith.addf %4, %3 : vector<4x512xf32>
    %6 = arith.mulf %5, %5 : vector<4x512xf32>
    %cst_2 = arith.constant 1.000000e+00 : f32
    %7 = vector.broadcast %cst_2 : f32 to vector<4x512xf32>
    %8 = arith.subf %6, %7 : vector<4x512xf32>
    %9 = arith.mulf %0, %8 : vector<4x512xf32>
    %cst_3 = arith.constant 1.000000e+00 : f32
    %10 = vector.broadcast %cst_3 : f32 to vector<4x512xf32>
    %11 = arith.addf %6, %10 : vector<4x512xf32>
    %12 = arith.divf %9, %11 : vector<4x512xf32>
    %cst_4 = arith.constant 2.000000e+01 : f32
    %13 = vector.broadcast %cst_4 : f32 to vector<4x512xf32>
    %14 = arith.cmpf ogt, %0, %13 : vector<4x512xf32>
    %15 = arith.select %14, %0, %12 : vector<4x512xi1>, vector<4x512xf32>
    %c0_5 = arith.constant 0 : index
    %c0_6 = arith.constant 0 : index
    %16 = vector.load %arg2[%c0_5, %c0_6] : memref<4x512xf32, #tpu.memory_space<vmem>>, vector<4x512xf32>
    tpu.vector_store %arg2[%c0_5, %c0_6], %15 {strides = array<i32>} : memref<4x512xf32, #tpu.memory_space<vmem>>, vector<4x512xf32>,
    return
  }
  func.func @transform_0(%arg0: i32) -> (i32, i32) {
    %c0_i32 = arith.constant 0 : i32
    %c0_i32_0 = arith.constant 0 : i32
    return %arg0, %c0_i32 : i32, i32
  }
  func.func @transform_1(%arg0: i32) -> (i32, i32) {
    %c0_i32 = arith.constant 0 : i32
    %c0_i32_0 = arith.constant 0 : i32
    return %arg0, %c0_i32 : i32, i32
  }
}

</mosaic_0001>

<bundles_post_ra>
// kernel: tpu_custom_call.1
= control target key start
LH: loop header
LB: loop body
LE: loop exit
PB: predicated region body
PF: predicated region fallthrough
CT: control target
= control target key end

     0   :  { %6 = vsyncpa [#allocation3], 0  ;;  %s160_s0 = inlined_call_operand.hbm [shape: f32[4,512], index: 0, kind: input, shape index: {}]   ;;  %s161_s1 = inlined_call_operand.hbm [shape: f32[4,512], index: 1, kind: output, shape index: {}]  }
   0x1   :  { %7 = vsyncpa [#allocation4], 0  ;;  %s124_s6 = smov [#allocation2]   ;;  %s76_s10 = scalar_lea.hbm %s160_s0, 256 }
   0x2   :  { %s14_s7 = sshll.u32 %s124_s6, 4  ;;  %p77_p0 = scmp.ne.s32.totalorder %s160_s0, %s76_s10  ;;  %s15_s7 = int_to_ptr.vmem [resolvable:$true] %s14_s7 }
   0x3   :  { %p80_p1 = scmp.lt.u32.totalorder %s76_s10, %s160_s0 }
   0x5   :  { %p82_p2 = pnand %p80_p1, %p77_p0 }
   0x7   :  { %85 = shalt.err (!%p82_p2)
}
   0x8   :  { %s86_s15 = scalar_lea.vmem %s15_s7, 256  ;;  %p91_p4 = scmp.lt.s32.totalorder %s15_s7, %s15_s7 }
   0x9   :  { %p87_p3 = scmp.ne.s32.totalorder %s15_s7, %s86_s15  ;;  %p92_p5 = scmp.lt.s32.totalorder %s86_s15, %s86_s15 }
   0xb   :  { %p93_p6 = por %p92_p5, %p91_p4 }
   0xd   :  { %p94_p7 = pnand %p93_p6, %p87_p3 }
   0xf   :  { %97 = shalt.err (!%p94_p7)
}
  0x10   :  { %17 = dma.hbm_to_vmem [thread:$0]  %s160_s0, 256, %s15_s7, [#allocation3]  }
  0x11   :  { %120 = dma.done.wait [#allocation3], 256  }
  0x12   :  { %121 = vsyncadd [#allocation3], 4294967040  ;;  %v21_v0 = vld [vmem:[#allocation2] sm:$0xff]  ;;  %v22_v1 = vld [vmem:[#allocation2 + $0x8] sm:$0xff]  ;;  %s125_s0 = smov [#allocation5]  }
  0x13   :  { %v23_v2 = vmin.f32 %v21_v0, 20.0  ;;  %v24_v3 = vmin.f32 %v22_v1, 20.0  ;;  %vm43_vm0 = vcmp.gt.f32.partialorder %v21_v0, 20.0  ;;  %s55_s18 = sshll.u32 %s125_s0, 4  ;;  %vm44_vm1 = vcmp.gt.f32.partialorder %v22_v1, 20.0  ;;  %s56_s18 = int_to_ptr.vmem [resolvable:$true] %s55_s18 }
  0x14   :  { %s98_s19 = scalar_lea.vmem %s56_s18, 256  ;;  %p103_p9 = scmp.lt.s32.totalorder %s56_s18, %s56_s18 }
  0x15   :  { %v25_v4 = vmul.f32 1.442695, %v23_v2  ;;  %v27_v5 = vmul.f32 1.442695, %v24_v3  ;;  %p99_p8 = scmp.ne.s32.totalorder %s56_s18, %s98_s19  ;;  %p104_p10 = scmp.lt.s32.totalorder %s98_s19, %s98_s19 }
  0x17   :  { %68 = vpow2.f32 %v25_v4  ;;  %p105_p11 = por %p104_p10, %p103_p9 }
  0x18   :  { %70 = vpow2.f32 %v27_v5 }
  0x19   :  { %p106_p12 = pnand %p105_p11, %p99_p8 }
  0x21   :  { %v69_v6 = vpop.eup %68 }
  0x22   :  { %v71_v7 = vpop.eup %70  ;;  %v29_v8 = vadd.f32 1.0, %v69_v6 }
  0x23   :  { %v30_v9 = vadd.f32 1.0, %v71_v7 }
  0x24   :  { %v31_v10 = vmul.f32 %v29_v8, %v29_v8 }
  0x25   :  { %v32_v11 = vmul.f32 %v30_v9, %v30_v9 }
  0x26   :  { %v37_v12 = vadd.f32 1.0, %v31_v10  ;;  %v64_v14 = vadd.f32 -1.0, %v31_v10 }
  0x27   :  { %v38_v13 = vadd.f32 1.0, %v32_v11  ;;  %v65_v15 = vadd.f32 -1.0, %v32_v11 }
  0x28   :  { %72 = vrcp.f32 %v37_v12  ;;  %v35_v16 = vmul.f32 %v64_v14, %v21_v0 }
  0x29   :  { %74 = vrcp.f32 %v38_v13  ;;  %v36_v17 = vmul.f32 %v65_v15, %v22_v1 }
  0x32   :  { %v73_v18 = vpop.eup %72 }
  0x33   :  { %v75_v19 = vpop.eup %74  ;;  %v40_v20 = vmul.f32 %v73_v18, %v35_v16 }
  0x34   :  { %v42_v21 = vmul.f32 %v75_v19, %v36_v17 }
  0x35   :  { %v45_v22 = vsel %vm43_vm0, %v21_v0, %v40_v20 }
  0x36   :  { %47 = vst [vmem:[#allocation5] sm:$0xff] %v45_v22  ;;  %v46_v23 = vsel %vm44_vm1, %v22_v1, %v42_v21 }
  0x37   :  { %48 = vst [vmem:[#allocation5 + $0x8] sm:$0xff] %v46_v23 }
  0x38   :  { %109 = shalt.err (!%p106_p12)
}
  0x39   :  { %s110_s22 = scalar_lea.hbm %s161_s1, 256 }
  0x3a   :  { %p111_p13 = scmp.ne.s32.totalorder %s161_s1, %s110_s22  ;;  %p114_p0 = scmp.lt.u32.totalorder %s110_s22, %s161_s1 }
  0x3c   :  { %p116_p1 = pnand %p114_p0, %p111_p13 }
  0x3e   :  { %119 = shalt.err (!%p116_p1)
}
  0x3f   :  { %58 = dma.vmem_to_hbm [thread:$0]  %s56_s18, 256, %s161_s1, [#allocation4]  }
  0x40   :  { %122 = dma.done.wait [#allocation4], 256  }
  0x41   :  { %123 = vsyncadd [#allocation4], 4294967040 }
  0x42   :  { %62 = vsyncpa [#allocation3], 1 }
  0x43   :  { %63 = vsyncpa [#allocation4], 1 }

</bundles_post_ra>
